<compile_context>
chip_gen: v6e
topology: v6e:2x2x1
jax: 0.10.0
libtpu: 0.0.40
codegen_flags: <defaults>
</compile_context>

<pallas_src>
import functools

import jax
import jax.numpy as jnp
from jax import lax
from jax.experimental import pallas as pl
from jax.experimental.pallas import tpu as pltpu


def _swish(v):
    # silu(v) = v * sigmoid(v); tanh form routes the transcendental to the EUP
    # slot (no VALU divide).  Always f32 (v5e has no bf16 VPU/EUP).
    return v * (0.5 * jnp.tanh(0.5 * v) + 0.5)


def _round_up(v, m):
    return (v + m - 1) // m * m


# ---------------------------------------------------------------------------
# Kernel A: streaming Dense->Swish + global add-pool into a resident per-core
# accumulator (the output block, constant across the node-tile axis).
# ---------------------------------------------------------------------------
def _pool_kernel(batch_ref, x_ref, w1_ref, b1_ref, part_ref, *, pool_dtype):
    i = pl.program_id(1)                 # node-tile index (reduction axis)
    g_pad = part_ref.shape[0]
    tile_n = x_ref.shape[0]

    @pl.when(i == 0)
    def _init():
        part_ref[...] = jnp.zeros_like(part_ref)

    # first Dense + Swish (f32 accumulation / f32 swish)
    h = jnp.dot(x_ref[...], w1_ref[...],
                preferred_element_type=jnp.float32) + b1_ref[...]
    h = _swish(h)

    # global add pool: tiny one-hot [G_pad, tile_n] @ h [tile_n, H].
    # Padded nodes carry graph id == g_pad -> never match -> contribute 0.
    gids = lax.broadcasted_iota(jnp.int32, (g_pad, tile_n), 0)
    onehot = (gids == batch_ref[...]).astype(pool_dtype)
    part_ref[...] += jnp.dot(onehot, h.astype(pool_dtype),
                             preferred_element_type=jnp.float32)


# ---------------------------------------------------------------------------
# Kernel B (tiny, runs once): combine per-core partials, apply the post-pool
# H x H Dense (+ per-aggregation bias/scale) and the predict MLP, all in f32.
# ---------------------------------------------------------------------------
def _finalize_kernel(part_ref, scale_ref, bias2_ref, w2_ref, w3_ref, b3_ref,
                     w4_ref, out_ref, *, num_graphs):
    pooled = jnp.sum(part_ref[...], axis=0)          # combine core partials
    pooled = pooled * scale_ref[...]                 # 1 (add) / 1/count (mean)
    pooled = jnp.dot(pooled, w2_ref[...],
                     preferred_element_type=jnp.float32) + bias2_ref[...]
    p = _swish(jnp.dot(pooled, w3_ref[...],
                       preferred_element_type=jnp.float32) + b3_ref[...])
    out = jnp.dot(p, w4_ref[...], preferred_element_type=jnp.float32)
    out_ref[...] = out[:num_graphs].astype(out_ref.dtype)


def node2property(x, batch, params, num_graphs, *, aggr="add",
                  compute_dtype=jnp.bfloat16, max_tile_n=2048, num_splits=2):
    """x: [N, in_dim] f32, batch: [N] int32 graph ids in [0, num_graphs)."""
    assert aggr in ("add", "mean")
    assert num_splits >= 1
    n_nodes, in_dim = x.shape
    w1, b1, w2, b2, w3, b3, w4 = params
    hidden = w1.shape[1]
    out_dim = w4.shape[1]

    g_pad = _round_up(num_graphs, 8)

    # ---- node tile: large multiple of 128, capped by the one-hot size -------
    cap = max(128, ((32 * 1024) // g_pad) // 128 * 128)   # ~32 vregs of one-hot
    req = max(128, (max_tile_n // 128) * 128)
    tile_n = min(req, cap)
    tile_n = min(tile_n, _round_up((n_nodes + num_splits - 1) // num_splits, 128))
    n_pad = _round_up(n_nodes, num_splits * tile_n)
    tiles_per_core = n_pad // (num_splits * tile_n)

    # ---- pad; padded nodes get graph id == g_pad (match nothing) ------------
    x_p = x if n_pad == n_nodes else jnp.pad(x, ((0, n_pad - n_nodes), (0, 0)))
    batch_p = jnp.full((1, n_pad), g_pad, dtype=jnp.int32)
    batch_p = batch_p.at[0, :n_nodes].set(batch.astype(jnp.int32))

    # ---- hot-loop dtypes (bf16 MXU inputs by default; f32 everywhere else) --
    cd = jnp.dtype(compute_dtype)
    if cd != jnp.float32:
        x_p = x_p.astype(cd)
        w1c = w1.astype(cd)
        pool_dtype = cd
    else:
        w1c = w1.astype(jnp.float32)
        pool_dtype = jnp.float32
    b1c = b1.reshape(1, hidden).astype(jnp.float32)

    # ---- per-graph counts precomputed once (O(N), outside the kernel) -------
    counts = jax.ops.segment_sum(jnp.ones((n_nodes,), jnp.float32),
                                 batch.astype(jnp.int32),
                                 num_segments=num_graphs)
    counts = jnp.pad(counts, (0, g_pad - num_graphs))
    b2_row = b2.reshape(1, hidden).astype(jnp.float32)
    if aggr == "add":
        # Pool_add(h@w2 + b2) = Pool_add(h) @ w2 + count_g * b2
        scale = jnp.ones((g_pad, hidden), jnp.float32)
        bias2 = counts[:, None] * b2_row
    else:
        # Pool_mean(h@w2 + b2) = Pool_mean(h) @ w2 + b2  (0 for empty graphs)
        nonempty = counts > 0.0
        inv = jnp.where(nonempty, 1.0 / jnp.maximum(counts, 1.0), 0.0)
        scale = jnp.broadcast_to(inv[:, None], (g_pad, hidden)).astype(jnp.float32)
        bias2 = jnp.where(nonempty[:, None], b2_row, 0.0)

    pool_cost = pl.CostEstimate(
        flops=2 * n_pad * hidden * (in_dim + g_pad),
        transcendentals=n_pad * hidden,
        bytes_accessed=(x_p.size * x_p.dtype.itemsize + batch_p.size * 4
                        + w1c.size * w1c.dtype.itemsize + b1c.size * 4
                        + num_splits * g_pad * hidden * 4))

    # ---- Kernel A: streaming pool, node axis split across cores -------------
    kernel_a = functools.partial(_pool_kernel, pool_dtype=pool_dtype)
    partials = pl.pallas_call(
        kernel_a,
        out_shape=jax.ShapeDtypeStruct((num_splits, g_pad, hidden), jnp.float32),
        grid_spec=pltpu.PrefetchScalarGridSpec(
            num_scalar_prefetch=0,
            grid=(num_splits, tiles_per_core),
            in_specs=[
                pl.BlockSpec((1, tile_n),
                             lambda c, i: (0, c * tiles_per_core + i)),
                pl.BlockSpec((tile_n, in_dim),
                             lambda c, i: (c * tiles_per_core + i, 0)),
                pl.BlockSpec(w1c.shape, lambda c, i: (0, 0)),
                pl.BlockSpec(b1c.shape, lambda c, i: (0, 0)),
            ],
            out_specs=pl.BlockSpec((None, g_pad, hidden), lambda c, i: (c, 0, 0)),
        ),
        compiler_params=pltpu.CompilerParams(
            dimension_semantics=("parallel", "arbitrary"),
            vmem_limit_bytes=48 * 1024 * 1024,
        ),
        cost_estimate=pool_cost,
    )(batch_p, x_p, w1c, b1c)

    # ---- Kernel B: combine partials + post-pool Dense + predict MLP (f32) ---
    kernel_b = functools.partial(_finalize_kernel, num_graphs=num_graphs)
    out = pl.pallas_call(
        kernel_b,
        out_shape=jax.ShapeDtypeStruct((num_graphs, out_dim), jnp.float32),
    )(partials, scale, bias2,
      w2.astype(jnp.float32), w3.astype(jnp.float32),
      b3.reshape(1, hidden).astype(jnp.float32), w4.astype(jnp.float32))
    return out


def _reference(x, batch, params, num_graphs, aggr="add"):
    w1, b1, w2, b2, w3, b3, w4 = params
    h = jax.nn.silu(x @ w1 + b1[0]) @ w2 + b2[0]
    pooled = jax.ops.segment_sum(h, batch, num_segments=num_graphs)
    if aggr == "mean":
        counts = jax.ops.segment_sum(jnp.ones((x.shape[0],), jnp.float32), batch,
                                     num_segments=num_graphs)[:, None]
        pooled = pooled / jnp.maximum(counts, 1.0)
    return jax.nn.silu(pooled @ w3 + b3[0]) @ w4


if __name__ == "__main__":
    # Small sizes consistent with the module (hidden_dim default = 128, out_dim = 1).
    N_NODES, IN_DIM, HIDDEN, OUT_DIM, NUM_GRAPHS = 30, 32, 128, 1, 3

    key = jax.random.PRNGKey(0)
    k = jax.random.split(key, 10)

    x = jax.random.normal(k[0], (N_NODES, IN_DIM), dtype=jnp.float32)
    batch = jnp.sort(jax.random.randint(k[8], (N_NODES,), 0, NUM_GRAPHS)).astype(jnp.int32)

    def init_w(kk, fan_in, fan_out):
        return jax.random.normal(kk, (fan_in, fan_out), jnp.float32) / jnp.sqrt(fan_in)

    params = (
        init_w(k[1], IN_DIM, HIDDEN),                              # w1
        jax.random.normal(k[2], (1, HIDDEN), jnp.float32) * 0.1,   # b1
        init_w(k[3], HIDDEN, HIDDEN),                              # w2
        jax.random.normal(k[4], (1, HIDDEN), jnp.float32) * 0.1,   # b2
        init_w(k[5], HIDDEN, HIDDEN),                              # w3
        jax.random.normal(k[6], (1, HIDDEN), jnp.float32) * 0.1,   # b3
        init_w(k[7], HIDDEN, OUT_DIM),                             # w4 (no bias)
    )

    # 1) f32, add-pool (grid (2, 1), w2 applied post-pool with count*b2 term).
    out_add = jax.block_until_ready(
        node2property(x, batch, params, NUM_GRAPHS, aggr="add",
                      compute_dtype=jnp.float32))
    ref_add = _reference(x, batch, params, NUM_GRAPHS, aggr="add")
    assert out_add.shape == (NUM_GRAPHS, OUT_DIM)
    assert jnp.allclose(out_add, ref_add, atol=2e-3, rtol=2e-3), (out_add, ref_add)

    # 2) f32, mean-pool (precomputed 1/count scale).
    out_mean = jax.block_until_ready(
        node2property(x, batch, params, NUM_GRAPHS, aggr="mean",
                      compute_dtype=jnp.float32))
    ref_mean = _reference(x, batch, params, NUM_GRAPHS, aggr="mean")
    assert jnp.allclose(out_mean, ref_mean, atol=2e-3, rtol=2e-3), (out_mean, ref_mean)

    # 3) multi-tile f32 path: N=300, tile_n=128 -> grid (2, 2), carried accumulator.
    x_big = jax.random.normal(k[9], (300, IN_DIM), dtype=jnp.float32)
    batch_big = jnp.sort(jax.random.randint(k[8], (300,), 0, NUM_GRAPHS)).astype(jnp.int32)
    out_big = jax.block_until_ready(
        node2property(x_big, batch_big, params, NUM_GRAPHS, aggr="add",
                      compute_dtype=jnp.float32, max_tile_n=128))
    ref_big = _reference(x_big, batch_big, params, NUM_GRAPHS, aggr="add")
    assert jnp.allclose(out_big, ref_big, atol=5e-3, rtol=5e-3), (out_big, ref_big)

    # 4) default path (bf16 MXU inputs, f32 accumulation/finalize): loose check.
    out_bf16 = jax.block_until_ready(
        node2property(x_big, batch_big, params, NUM_GRAPHS, aggr="add"))
    assert out_bf16.shape == (NUM_GRAPHS, OUT_DIM)
    assert bool(jnp.all(jnp.isfinite(out_bf16)))
    rel = float(jnp.max(jnp.abs(out_bf16 - ref_big))
                / (jnp.max(jnp.abs(ref_big)) + 1e-6))
    assert rel < 0.1, rel

    print("KERNEL_OK")
</pallas_src>

<mosaic_0001>
module attributes {stable_mosaic.version = 11 : i64} {
  func.func @_pool_kernel(%arg0: i32, %arg1: i32, %arg2: memref<1x128xi32, #tpu.memory_space<vmem>>, %arg3: memref<128x32xf32, #tpu.memory_space<vmem>>, %arg4: memref<32x128xf32, #tpu.memory_space<vmem>>, %arg5: memref<1x128xf32, #tpu.memory_space<vmem>>, %arg6: memref<1x8x128xf32, #tpu.memory_space<vmem>>) attributes {dimension_semantics = [#tpu.dimension_semantics<parallel>, #tpu.dimension_semantics<arbitrary>], iteration_bounds = array<i64: 2, 1>, scalar_prefetch = 0 : i64, scratch_operands = 0 : i64, tpu.core_type = #tpu.core_type<tc>, window_params = [{transform_indices = @transform_0, window_bounds = array<i64: 1, 128>}, {transform_indices = @transform_1, window_bounds = array<i64: 128, 32>}, {pipeline_mode = #tpu.pipeline_mode<synchronous>, transform_indices = @transform_2, window_bounds = array<i64: 32, 128>}, {pipeline_mode = #tpu.pipeline_mode<synchronous>, transform_indices = @transform_3, window_bounds = array<i64: 1, 128>}, {transform_indices = @transform_4, window_bounds = array<i64: 1, 8, 128>}]} {
    %c0_i32 = arith.constant 0 : i32
    %0 = arith.cmpi eq, %arg1, %c0_i32 : i32
    %1 = arith.extui %0 : i1 to i32
    %c0_i32_0 = arith.constant 0 : i32
    %2 = arith.cmpi ne, %1, %c0_i32_0 : i32
    scf.if %2 {
      %cst_18 = arith.constant 0.000000e+00 : f32
      %30 = vector.broadcast %cst_18 : f32 to vector<8x128xf32>
      %c0_19 = arith.constant 0 : index
      %c0_20 = arith.constant 0 : index
      %c0_21 = arith.constant 0 : index
      %31 = vector.load %arg6[%c0_19, %c0_20, %c0_21] : memref<1x8x128xf32, #tpu.memory_space<vmem>>, vector<1x8x128xf32>
      %32 = vector.shape_cast %31 : vector<1x8x128xf32> to vector<8x128xf32>
      %33 = vector.shape_cast %30 : vector<8x128xf32> to vector<1x8x128xf32>
      tpu.vector_store %arg6[%c0_19, %c0_20, %c0_21], %33 {strides = array<i32>} : memref<1x8x128xf32, #tpu.memory_space<vmem>>, vector<1x8x128xf32>,
    } else {
    }
    %c0 = arith.constant 0 : index
    %c0_1 = arith.constant 0 : index
    %3 = vector.load %arg3[%c0, %c0_1] : memref<128x32xf32, #tpu.memory_space<vmem>>, vector<128x32xf32>
    %c0_2 = arith.constant 0 : index
    %c0_3 = arith.constant 0 : index
    %4 = vector.load %arg4[%c0_2, %c0_3] : memref<32x128xf32, #tpu.memory_space<vmem>>, vector<32x128xf32>
    %cst = arith.constant dense<0.000000e+00> : vector<128x128xf32>
    %5 = tpu.matmul %3, %4, %cst {dimension_numbers = #tpu.dot_dimension_numbers<[1], [0], [0], [1], [0, 0, 1, 1], [], []>} : vector<128x32xf32>, vector<32x128xf32>, vector<128x128xf32> -> vector<128x128xf32>
    %c0_4 = arith.constant 0 : index
    %c0_5 = arith.constant 0 : index
    %6 = vector.load %arg5[%c0_4, %c0_5] : memref<1x128xf32, #tpu.memory_space<vmem>>, vector<1x128xf32>
    %7 = vector.broadcast %6 : vector<1x128xf32> to vector<128x128xf32>
    %8 = arith.addf %5, %7 : vector<128x128xf32>
    %cst_6 = arith.constant 5.000000e-01 : f32
    %9 = vector.broadcast %cst_6 : f32 to vector<128x128xf32>
    %10 = arith.mulf %9, %8 : vector<128x128xf32>
    %11 = math.tanh %10 : vector<128x128xf32>
    %cst_7 = arith.constant 5.000000e-01 : f32
    %12 = vector.broadcast %cst_7 : f32 to vector<128x128xf32>
    %13 = arith.mulf %12, %11 : vector<128x128xf32>
    %cst_8 = arith.constant 5.000000e-01 : f32
    %14 = vector.broadcast %cst_8 : f32 to vector<128x128xf32>
    %15 = arith.addf %13, %14 : vector<128x128xf32>
    %16 = arith.mulf %8, %15 : vector<128x128xf32>
    %17 = tpu.iota {dimensions = array<i32: 0>} : vector<8x128xi32>
    %c0_9 = arith.constant 0 : index
    %c0_10 = arith.constant 0 : index
    %18 = vector.load %arg2[%c0_9, %c0_10] : memref<1x128xi32, #tpu.memory_space<vmem>>, vector<1x128xi32>
    %19 = vector.broadcast %18 : vector<1x128xi32> to vector<8x128xi32>
    %20 = arith.cmpi eq, %17, %19 : vector<8x128xi32>
    %21 = arith.extui %20 : vector<8x128xi1> to vector<8x128xi32>
    %22 = arith.sitofp %21 : vector<8x128xi32> to vector<8x128xf32>
    %c0_11 = arith.constant 0 : index
    %c0_12 = arith.constant 0 : index
    %c0_13 = arith.constant 0 : index
    %23 = vector.load %arg6[%c0_11, %c0_12, %c0_13] : memref<1x8x128xf32, #tpu.memory_space<vmem>>, vector<1x8x128xf32>
    %24 = vector.shape_cast %23 : vector<1x8x128xf32> to vector<8x128xf32>
    %cst_14 = arith.constant dense<0.000000e+00> : vector<8x128xf32>
    %25 = tpu.matmul %22, %16, %cst_14 {dimension_numbers = #tpu.dot_dimension_numbers<[1], [0], [0], [1], [0, 0, 1, 1], [], []>} : vector<8x128xf32>, vector<128x128xf32>, vector<8x128xf32> -> vector<8x128xf32>
    %26 = arith.addf %24, %25 : vector<8x128xf32>
    %c0_15 = arith.constant 0 : index
    %c0_16 = arith.constant 0 : index
    %c0_17 = arith.constant 0 : index
    %27 = vector.load %arg6[%c0_15, %c0_16, %c0_17] : memref<1x8x128xf32, #tpu.memory_space<vmem>>, vector<1x8x128xf32>
    %28 = vector.shape_cast %27 : vector<1x8x128xf32> to vector<8x128xf32>
    %29 = vector.shape_cast %26 : vector<8x128xf32> to vector<1x8x128xf32>
    tpu.vector_store %arg6[%c0_15, %c0_16, %c0_17], %29 {strides = array<i32>} : memref<1x8x128xf32, #tpu.memory_space<vmem>>, vector<1x8x128xf32>,
    return
  }
  func.func @transform_0(%arg0: i32, %arg1: i32) -> (i32, i32) {
    %c1_i32 = arith.constant 1 : i32
    %0 = arith.muli %arg0, %c1_i32 : i32
    %1 = arith.addi %0, %arg1 : i32
    %c0_i32 = arith.constant 0 : i32
    %c0_i32_0 = arith.constant 0 : i32
    return %c0_i32, %1 : i32, i32
  }
  func.func @transform_1(%arg0: i32, %arg1: i32) -> (i32, i32) {
    %c1_i32 = arith.constant 1 : i32
    %0 = arith.muli %arg0, %c1_i32 : i32
    %1 = arith.addi %0, %arg1 : i32
    %c0_i32 = arith.constant 0 : i32
    %c0_i32_0 = arith.constant 0 : i32
    return %1, %c0_i32 : i32, i32
  }
  func.func @transform_2(%arg0: i32, %arg1: i32) -> (i32, i32) {
    %c0_i32 = arith.constant 0 : i32
    %c0_i32_0 = arith.constant 0 : i32
    %c0_i32_1 = arith.constant 0 : i32
    return %c0_i32, %c0_i32_0 : i32, i32
  }
  func.func @transform_3(%arg0: i32, %arg1: i32) -> (i32, i32) {
    %c0_i32 = arith.constant 0 : i32
    %c0_i32_0 = arith.constant 0 : i32
    %c0_i32_1 = arith.constant 0 : i32
    return %c0_i32, %c0_i32_0 : i32, i32
  }
  func.func @transform_4(%arg0: i32, %arg1: i32) -> (i32, i32, i32) {
    %c0_i32 = arith.constant 0 : i32
    %c0_i32_0 = arith.constant 0 : i32
    %c0_i32_1 = arith.constant 0 : i32
    return %arg0, %c0_i32, %c0_i32_0 : i32, i32, i32
  }
}

</mosaic_0001>

<bundles_post_ra>
// kernel: tpu_custom_call.1
= control target key start
LH: loop header
LB: loop body
LE: loop exit
PB: predicated region body
PF: predicated region fallthrough
CT: control target
= control target key end

     0   :  { %9 = vsyncpa [#allocation3], 0  ;;  %s1281_s0 = inlined_call_operand.vmem [shape: s32[1,256], index: 0, kind: input, shape index: {}]   ;;  %s1282_s1 = inlined_call_operand.vmem [shape: f32[256,32], index: 1, kind: input, shape index: {}]   ;;  %s1283_s2 = inlined_call_operand.vmem [shape: f32[32,128], index: 2, kind: input, shape index: {}]   ;;  %s1284_s3 = inlined_call_operand.vmem [shape: f32[1,128], index: 3, kind: input, shape index: {}]   ;;  %s1285_s4 = inlined_call_operand.hbm [shape: f32[2,8,128], index: 4, kind: output, shape index: {}]  }
   0x1   :  { %11 = vsyncpa [#allocation3 + $0x1], 0  ;;  %s1050_s15 = smov 0   ;;  %s1052_s16 = smov 0  }
   0x2   :  { %s1054_s17 = smov 0   ;;  %s1056_s18 = smov 0  }
   0x3   :  { %s1058_s19 = smov 0   ;;  %s1060_s20 = smov 0  }
   0x4 LB: > { %s717_s21 = sadd.s32 4294967295, %s1019_s20   ;;  %s718_s22 = sadd.s32 4294967294, %s1019_s20   ;;  %s1019_s20 = sphi %s1060_s20, %s17_s20   ;;  %s1015_s19 = sphi %s1058_s19, %s1292_s19   ;;  %s1011_s18 = sphi %s1056_s18, %s1291_s18   ;;  %s1007_s17 = sphi %s1054_s17, %s1290_s17   ;;  %s1003_s16 = sphi %s1052_s16, %s1289_s16   ;;  %s999_s15 = sphi %s1050_s15, %s1288_s15  }
   0x5   : > { %s29_s23 = sadd.s32 1, %s1015_s19  ;;  %s134_s24 = sadd.s32 1, %s1007_s17 }
   0x6   : > { %p31_p0 = scmp.ge.s32.totalorder %s29_s23, 2  ;;  %p144_p1 = scmp.ne.s32.totalorder %s1007_s17, %s1003_s16 }
   0x7   : > { %p145_p2 = scmp.eq.s32.totalorder %s717_s21, 1  ;;  %p150_p3 = scmp.ne.s32.totalorder %s1003_s16, %s999_s15 }
   0x8   : > { %s1294_s23 = smov (%p31_p0, %s29_s23), 0  ;;  %p151_p5 = scmp.eq.s32.totalorder %s718_s22, 1 }
   0x9   : > { %p1090_p4 = por %p145_p2, %p144_p1  ;;  %s131_s26 = ssub.s32 %s1015_s19, %s1294_s23 }
   0xa   : > { %p721_p6 = scmp.ge.s32.totalorder %s1019_s20, 1  ;;  %p132_p7 = scmp.eq.s32.totalorder %s131_s26, 0 }
   0xb   : > { %p1097_p8 = por %p151_p5, %p150_p3  ;;  %p194_p9 = scmp.lt.s32.totalorder %s1019_s20, 3 }
   0xc   : > { %s1103_s28 = scalar_select %p132_p7, %s1007_s17, %s134_s24  }
   0xd   : > { %p195_p10 = pnand %p721_p6, %p194_p9 }
   0xe   : > { %s723_s7 = sshll.u32 (!%p195_p10), %s1011_s18, 4  ;;  %p226_p12 = scmp.lt.s32.totalorder (!%p195_p10), %s1011_s18, 1 }
   0xf   : > { %198 = sbr.rel (%p195_p10) target bundleno = 512 (0x200), region = 36  ;;  %p232_p11 = scmp.lt.s32.totalorder (!%p195_p10), %s723_s7, 31 }
  0x10   : > { %s222_s6 = sand.u32 (!%p195_p10), 1, %s1003_s16   ;;  %s746_s8 = sshll.u32 (!%p195_p10), %s1011_s18, 7 }
  0x11   : > { %s1241_s13 = scalar_lea.hbm (!%p195_p10), %s1285_s4, %s746_s8  ;;  %s628_s14 = scalar_lea.sflag (!%p195_p10), [#allocation3], %s222_s6 }
  0x12   : > { %s1024_s22 = smov (!%p195_p10), [#allocation2]  }
  0x13   : > { %s947_s24 = sshll.u32 (!%p195_p10), %s1024_s22, 4  ;;  %s948_s24 = int_to_ptr.vmem [resolvable:$false] %s947_s24 }
  0x14   : > { %v262_v0 = vld [vmem:[%s1283_s2 + $0x18] sm:$0xff]  ;;  %v261_v1 = vld [vmem:[%s1283_s2 + $0x10] sm:$0xff]  ;;  %v260_v2 = vld [vmem:[%s1283_s2 + $0x8] sm:$0xff]  ;;  %s1296_s7 = smov (!%p232_p11, %s723_s7), 31  ;;  %vm270_vm0 = vcmask 261120   ;;  %v1021_v20 = vmov 0.0  }
  0x15   : > { %786 = vmatprep.subr.mxu0 %v262_v0  ;;  %v259_v3 = vld [vmem:[%s1283_s2] sm:$0xff]  ;;  %s724_s12 = sshll.u32 %s1296_s7, 3  ;;  %818 = vmatprep.subr.mxu1 %v1021_v20  ;;  %vm1022_vm1 = vmmov 0   ;;  %s722_s7 = sshll.u32 %s222_s6, 3 }
  0x16   : > { %787 = vmatpush3.msra.mxu0 %v262_v0  ;;  %s1121_s21 = scalar_lea.vmem %s1282_s1, %s724_s12  ;;  %850 = vmatprep.mubr.msk.f32.mxu1 %vm1022_vm1, %v1021_v20  ;;  %v725_v33 = vld [vmem:[%s1284_s3] ss:$0 sm:$0xff]  ;;  %s224_s9 = scalar_lea.vmem [#allocation2], %s722_s7 }
  0x17   : > { %788 = vmatprep.subr.mxu0 %v261_v1  ;;  %v243_v4 = vld [vmem:[%s1121_s21] sm:$0xff]  ;;  %v244_v5 = vld [vmem:[%s1121_s21 + $0x8] sm:$0xff]  ;;  %v245_v6 = vld [vmem:[%s1121_s21 + $0x10] sm:$0xff]  ;;  %s227_s26 = scalar_select %p226_p12, %s1011_s18, 1 }
  0x18   : > { %789 = vmatpush3.msra.mxu0 %v261_v1  ;;  %794 = vmatprep.mubr.msk.f32.mxu0 %vm270_vm0, %v243_v4  ;;  %v246_v7 = vld [vmem:[%s1121_s21 + $0x18] sm:$0xff]  ;;  %v247_v8 = vld [vmem:[%s1121_s21 + $0x20] sm:$0xff]  ;;  %v248_v9 = vld [vmem:[%s1121_s21 + $0x28] sm:$0xff]  ;;  %s641_s10 = sshll.u32 %s224_s9, 4  ;;  %s949_s18 = scalar_lea.vmem %s948_s24, 256  ;;  %s642_s10 = int_to_ptr.vmem [resolvable:$true] %s641_s10 }
  0x19   : > { %790 = vmatprep.subr.mxu0 %v260_v2  ;;  %v249_v10 = vld [vmem:[%s1121_s21 + $0x30] sm:$0xff]  ;;  %v250_v11 = vld [vmem:[%s1121_s21 + $0x38] sm:$0xff]  ;;  %v251_v12 = vld [vmem:[%s1121_s21 + $0x40] sm:$0xff]  ;;  %s228_s5 = scalar_lea.vmem %s1281_s0, %s227_s26  ;;  %p950_p2 = scmp.lt.s32.totalorder %s642_s10, %s948_s24 }
  0x1a   : > { %791 = vmatpush3.msra.mxu0 %v260_v2  ;;  %v252_v13 = vld [vmem:[%s1121_s21 + $0x48] sm:$0xff]  ;;  %v253_v14 = vld [vmem:[%s1121_s21 + $0x50] sm:$0xff]  ;;  %v254_v15 = vld [vmem:[%s1121_s21 + $0x58] sm:$0xff] }
  0x1b   : > { %792 = vmatprep.subr.mxu0 %v259_v3  ;;  %v255_v16 = vld [vmem:[%s1121_s21 + $0x60] sm:$0xff]  ;;  %v256_v17 = vld [vmem:[%s1121_s21 + $0x68] sm:$0xff]  ;;  %v257_v18 = vld [vmem:[%s1121_s21 + $0x70] sm:$0xff] }
  0x1c   : > { %793 = vmatpush3.msra.mxu0 %v259_v3  ;;  %v258_v19 = vld [vmem:[%s1121_s21 + $0x78] sm:$0xff]  ;;  %s943_s21 = scalar_lea.vmem %s642_s10, 128 }
  0x1d   : > { %795 = vmatmul.mubr.msk.f32.vlgmr.msra.gmra.mxu0 %vm270_vm0, %v244_v5  ;;  %p944_p13 = scmp.ne.s32.totalorder %s642_s10, %s943_s21  ;;  %p951_p3 = scmp.lt.s32.totalorder %s949_s18, %s943_s21 }
  0x1e   : > { %797 = vmatprep.mubr.msk.f32.mxu0 %vm270_vm0, %v245_v6 }
  0x1f   : > { %p945_p0 = pnand %p944_p13, %p1090_p4  ;;  %p952_p5 = por %p951_p3, %p950_p2 }
  0x21   : > { %798 = vmatmul.mubr.msk.f32.gmra.mxu0 %vm270_vm0, %v246_v7  ;;  %p946_p1 = pneg %p945_p0 }
  0x22   : > { %800 = vmatprep.mubr.msk.f32.mxu0 %vm270_vm0, %v247_v8 }
  0x23   : > { %p953_p6 = pnand %p952_p5, %p946_p1 }
  0x25   : > { %801 = vmatmul.mubr.msk.f32.gmra.mxu0 %vm270_vm0, %v248_v9 }
  0x26   : > { %803 = vmatprep.mubr.msk.f32.mxu0 %vm270_vm0, %v249_v10 }
  0x29   : > { %804 = vmatmul.mubr.msk.f32.gmra.mxu0 %vm270_vm0, %v250_v11 }
  0x2a   : > { %806 = vmatprep.mubr.msk.f32.mxu0 %vm270_vm0, %v251_v12 }
  0x2d   : > { %807 = vmatmul.mubr.msk.f32.gmra.mxu0 %vm270_vm0, %v252_v13 }
  0x2e   : > { %809 = vmatprep.mubr.msk.f32.mxu0 %vm270_vm0, %v253_v14 }
  0x31   : > { %810 = vmatmul.mubr.msk.f32.gmra.mxu0 %vm270_vm0, %v254_v15 }
  0x32   : > { %812 = vmatprep.mubr.msk.f32.mxu0 %vm270_vm0, %v255_v16 }
  0x35   : > { %813 = vmatmul.mubr.msk.f32.gmra.mxu0 %vm270_vm0, %v256_v17 }
  0x36   : > { %815 = vmatprep.mubr.msk.f32.mxu0 %vm270_vm0, %v257_v18 }
  0x39   : > { %816 = vmatmul.mubr.msk.f32.gmra.mxu0 %vm270_vm0, %v258_v19 }
  0xdd   : > { %v796_v21 = vpop.f32.mrf.mxu0 }
  0xde   : > { %v1194_v3 = vadd.f32 %v796_v21, %v725_v33 }
  0xdf   : > { %v385_v22 = vpop.f32.mrf.mxu0 }
  0xe0   : > { %v1197_v9 = vadd.f32 %v725_v33, %v385_v22  ;;  %v465_v15 = vmul.f32 0.5, %v1194_v3 }
  0xe1   : > { %v799_v23 = vpop.f32.mrf.mxu0 }
  0xe2   : > { %v1188_v60 = vadd.f32 %v799_v23, %v725_v33 }
  0xe3   : > { %v395_v24 = vpop.f32.mrf.mxu0 }
  0xe4   : > { %v1191_v0 = vadd.f32 %v725_v33, %v395_v24  ;;  %v467_v5 = vmul.f32 0.5, %v1188_v60  ;;  %v464_v24 = vmul.f32 0.5, %v1197_v9 }
  0xe5   : > { %v802_v25 = vpop.f32.mrf.mxu0 }
  0xe6   : > { %v1182_v56 = vadd.f32 %v802_v25, %v725_v33  ;;  %v466_v11 = vmul.f32 0.5, %v1191_v0 }
  0xe7   : > { %v405_v26 = vpop.f32.mrf.mxu0 }
  0xe8   : > { %v1185_v58 = vadd.f32 %v725_v33, %v405_v26  ;;  %v469_v61 = vmul.f32 0.5, %v1182_v56 }
  0xe9   : > { %v805_v27 = vpop.f32.mrf.mxu0 }
  0xea   : > { %v1176_v52 = vadd.f32 %v805_v27, %v725_v33  ;;  %v468_v1 = vmul.f32 0.5, %v1185_v58 }
  0xeb   : > { %v415_v28 = vpop.f32.mrf.mxu0 }
  0xec   : > { %v1179_v54 = vadd.f32 %v725_v33, %v415_v28  ;;  %v471_v57 = vmul.f32 0.5, %v1176_v52 }
  0xed   : > { %v808_v29 = vpop.f32.mrf.mxu0 }
  0xee   : > { %v1170_v46 = vadd.f32 %v808_v29, %v725_v33  ;;  %v470_v59 = vmul.f32 0.5, %v1179_v54 }
  0xef   : > { %v425_v30 = vpop.f32.mrf.mxu0 }
  0xf0   : > { %v1173_v50 = vadd.f32 %v725_v33, %v425_v30  ;;  %v473_v53 = vmul.f32 0.5, %v1170_v46 }
  0xf1   : > { %v811_v31 = vpop.f32.mrf.mxu0 }
  0xf2   : > { %v1162_v37 = vadd.f32 %v811_v31, %v725_v33  ;;  %v472_v55 = vmul.f32 0.5, %v1173_v50 }
  0xf3   : > { %v435_v32 = vpop.f32.mrf.mxu0 }
  0xf4   : > { %v1167_v41 = vadd.f32 %v725_v33, %v435_v32  ;;  %v475_v47 = vmul.f32 0.5, %v1162_v37 }
  0xf5   : > { %v814_v34 = vpop.f32.mrf.mxu0 }
  0xf6   : > { %v1160_v35 = vadd.f32 %v814_v34, %v725_v33  ;;  %v474_v51 = vmul.f32 0.5, %v1167_v41 }
  0xf7   : > { %v445_v36 = vpop.f32.mrf.mxu0 }
  0xf8   : > { %v477_v38 = vmul.f32 0.5, %v1160_v35  ;;  %v1165_v39 = vadd.f32 %v725_v33, %v445_v36 }
  0xf9   : > { %v817_v40 = vpop.f32.mrf.mxu0 }
  0xfa   : > { %v476_v42 = vmul.f32 0.5, %v1165_v39  ;;  %v461_v43 = vadd.f32 %v817_v40, %v725_v33  ;;  %911 = vtanh.f32 %v477_v38 }
  0xfb   : > { %v455_v44 = vpop.f32.mrf.mxu0 }
  0xfc   : > { %v456_v45 = vadd.f32 %v725_v33, %v455_v44  ;;  %v479_v48 = vmul.f32 0.5, %v461_v43  ;;  %913 = vtanh.f32 %v476_v42 }
  0xfe   : > { %v478_v49 = vmul.f32 0.5, %v456_v45  ;;  %915 = vtanh.f32 %v479_v48 }
 0x100   : > { %917 = vtanh.f32 %v478_v49 }
 0x101   : > { %919 = vtanh.f32 %v475_v47 }
 0x102   : > { %921 = vtanh.f32 %v474_v51 }
 0x103   : > { %923 = vtanh.f32 %v473_v53 }
 0x104   : > { %925 = vtanh.f32 %v472_v55 }
 0x105   : > { %927 = vtanh.f32 %v471_v57 }
 0x106   : > { %929 = vtanh.f32 %v470_v59 }
 0x107   : > { %v912_v62 = vpop.eup %911  ;;  %931 = vtanh.f32 %v469_v61 }
 0x108   : > { %v509_v6 = vmul.f32 0.5, %v912_v62  ;;  %933 = vtanh.f32 %v468_v1 }
 0x109   : > { %v914_v63 = vpop.eup %913  ;;  %935 = vtanh.f32 %v467_v5 }
 0x10a   : > { %v508_v12 = vmul.f32 0.5, %v914_v63  ;;  %v525_v18 = vadd.f32 0.5, %v509_v6  ;;  %937 = vtanh.f32 %v466_v11  ;;  %v742_v11 = vld [vmem:[%s228_s5] ss:$0 sm:$0xff] }
 0x10b   : > { %v916_v2 = vpop.eup %915  ;;  %939 = vtanh.f32 %v465_v15 }
 0x10c   : > { %v511_v7 = vmul.f32 0.5, %v916_v2  ;;  %v524_v25 = vadd.f32 0.5, %v508_v12  ;;  %v541_v29 = vmul.f32 %v525_v18, %v1160_v35  ;;  %941 = vtanh.f32 %v464_v24 }
 0x10d   : > { %v918_v4 = vpop.eup %917 }
 0x10e   : > { %v920_v8 = vpop.eup %919  ;;  %v510_v10 = vmul.f32 0.5, %v918_v4  ;;  %v527_v13 = vadd.f32 0.5, %v511_v7  ;;  %v540_v33 = vmul.f32 %v524_v25, %v1165_v39  ;;  %v544_v7 = vlaneseq }
 0x10f   : > { %v922_v14 = vpop.eup %921  ;;  %v507_v17 = vmul.f32 0.5, %v920_v8 }
 0x110   : > { %v526_v16 = vadd.f32 0.5, %v510_v10  ;;  %v543_v19 = vmul.f32 %v527_v13, %v461_v43  ;;  %v924_v21 = vpop.eup %923  ;;  %v506_v22 = vmul.f32 0.5, %v922_v14 }
 0x111   : > { %v926_v26 = vpop.eup %925  ;;  %v505_v27 = vmul.f32 0.5, %v924_v21  ;;  %v523_v28 = vadd.f32 0.5, %v507_v17 }
 0x112   : > { %v542_v23 = vmul.f32 %v526_v16, %v456_v45  ;;  %819 = vmatpush3.msra.mxu1 %v543_v19  ;;  %v928_v30 = vpop.eup %927  ;;  %v504_v31 = vmul.f32 0.5, %v926_v26  ;;  %v522_v32 = vadd.f32 0.5, %v506_v22 }
 0x113   : > { %820 = vmatprep.subr.mxu1 %v1021_v20  ;;  %v930_v34 = vpop.eup %929  ;;  %v503_v36 = vmul.f32 0.5, %v928_v30  ;;  %v521_v38 = vadd.f32 0.5, %v505_v27  ;;  %v539_v40 = vmul.f32 %v523_v28, %v1162_v37 }
 0x114   : > { %821 = vmatpush3.msra.mxu1 %v542_v23  ;;  %v932_v42 = vpop.eup %931  ;;  %v502_v35 = vmul.f32 0.5, %v930_v34  ;;  %v520_v43 = vadd.f32 0.5, %v504_v31  ;;  %v538_v44 = vmul.f32 %v522_v32, %v1167_v41 }
 0x115   : > { %822 = vmatprep.subr.mxu1 %v1021_v20  ;;  %v934_v45 = vpop.eup %933  ;;  %v501_v39 = vmul.f32 0.5, %v932_v42  ;;  %v519_v47 = vadd.f32 0.5, %v503_v36  ;;  %v537_v48 = vmul.f32 %v521_v38, %v1170_v46 }
 0x116   : > { %823 = vmatpush3.msra.mxu1 %v541_v29  ;;  %v936_v49 = vpop.eup %935  ;;  %v500_v37 = vmul.f32 0.5, %v934_v45  ;;  %v518_v51 = vadd.f32 0.5, %v502_v35  ;;  %v536_v53 = vmul.f32 %v520_v43, %v1173_v50 }
 0x117   : > { %824 = vmatprep.subr.mxu1 %v1021_v20  ;;  %v938_v55 = vpop.eup %937  ;;  %v499_v41 = vmul.f32 0.5, %v936_v49  ;;  %v517_v57 = vadd.f32 0.5, %v501_v39  ;;  %v535_v59 = vmul.f32 %v519_v47, %v1176_v52 }
 0x118   : > { %825 = vmatpush3.msra.mxu1 %v540_v33  ;;  %v940_v46 = vpop.eup %939  ;;  %v498_v61 = vmul.f32 0.5, %v938_v55  ;;  %v516_v62 = vadd.f32 0.5, %v500_v37  ;;  %v534_v63 = vmul.f32 %v518_v51, %v1179_v54 }
 0x119   : > { %826 = vmatprep.subr.mxu1 %v1021_v20  ;;  %v942_v50 = vpop.eup %941  ;;  %v497_v1 = vmul.f32 0.5, %v940_v46  ;;  %v515_v2 = vadd.f32 0.5, %v499_v41  ;;  %v533_v4 = vmul.f32 %v517_v57, %v1182_v56 }
 0x11a   : > { %827 = vmatpush3.msra.mxu1 %v539_v40  ;;  %v496_v52 = vmul.f32 0.5, %v942_v50  ;;  %v514_v5 = vadd.f32 0.5, %v498_v61  ;;  %v532_v6 = vmul.f32 %v516_v62, %v1185_v58  ;;  %v545_v58 = vshrl.u32 %v544_v7, 7 }
 0x11b   : > { %828 = vmatprep.subr.mxu1 %v1021_v20  ;;  %v513_v54 = vadd.f32 0.5, %v497_v1  ;;  %v531_v8 = vmul.f32 %v515_v2, %v1188_v60 }
 0x11c   : > { %829 = vmatpush3.msra.mxu1 %v538_v44  ;;  %v512_v56 = vadd.f32 0.5, %v496_v52  ;;  %v530_v10 = vmul.f32 %v514_v5, %v1191_v0  ;;  %vm551_vm2 = vcmp.eq.s32.totalorder %v545_v58, %v742_v11  ;;  %v1023_v0 = vmov 1.0  }
 0x11d   : > { %830 = vmatprep.subr.mxu1 %v1021_v20  ;;  %v529_v12 = vmul.f32 %v513_v54, %v1194_v3 }
 0x11e   : > { %831 = vmatpush3.msra.mxu1 %v537_v48  ;;  %v528_v60 = vmul.f32 %v512_v56, %v1197_v9 }
 0x11f   : > { %832 = vmatprep.subr.mxu1 %v1021_v20 }
 0x120   : > { %833 = vmatpush3.msra.mxu1 %v536_v53 }
 0x121   : > { %834 = vmatprep.subr.mxu1 %v1021_v20 }
 0x122   : > { %835 = vmatpush3.msra.mxu1 %v535_v59 }
 0x123   : > { %836 = vmatprep.subr.mxu1 %v1021_v20 }
 0x124   : > { %837 = vmatpush3.msra.mxu1 %v534_v63 }
 0x125   : > { %838 = vmatprep.subr.mxu1 %v1021_v20 }
 0x126   : > { %839 = vmatpush3.msra.mxu1 %v533_v4 }
 0x127   : > { %840 = vmatprep.subr.mxu1 %v1021_v20 }
 0x128   : > { %841 = vmatpush3.msra.mxu1 %v532_v6 }
 0x129   : > { %842 = vmatprep.subr.mxu1 %v1021_v20 }
 0x12a   : > { %843 = vmatpush3.msra.mxu1 %v531_v8 }
 0x12b   : > { %844 = vmatprep.subr.mxu1 %v1021_v20 }
 0x12c   : > { %845 = vmatpush3.msra.mxu1 %v530_v10 }
 0x12d   : > { %846 = vmatprep.subr.mxu1 %v1021_v20 }
 0x12e   : > { %847 = vmatpush3.msra.mxu1 %v529_v12 }
 0x12f   : > { %848 = vmatprep.subr.mxu1 %v1021_v20 }
 0x130   : > { %849 = vmatpush3.msra.mxu1 %v528_v60 }
 0x131   : > { %851 = vmatmul.mubr.msk.f32.vlgmr.msra.gmra.mxu1 %vm551_vm2, %v1023_v0 }
 0x1f1   : > { %v621_v13 = vpop.f32.mrf.mxu1 }
 0x1f2   : > { %626 = vst [vmem:[%s224_s9] sm:$0xff] %v621_v13 }
 0x1f3   : > { %v852_v3 = vpop.f32.mrf.mxu1 }
 0x1f4   : > { %956 = shalt.err (!%p953_p6)
}
 0x1f5   : > { %s957_s26 = scalar_lea.hbm %s1241_s13, 128  ;;  %s961_s5 = scalar_lea.hbm %s1285_s4, 256 }
 0x1f6   : > { %p958_p7 = scmp.ne.s32.totalorder %s1241_s13, %s957_s26  ;;  %p962_p11 = scmp.lt.s32.totalorder %s1241_s13, %s1285_s4 }
 0x1f7   : > { %p963_p12 = scmp.lt.s32.totalorder %s961_s5, %s957_s26 }
 0x1f8   : > { %p959_p9 = pnand %p958_p7, %p1090_p4 }
 0x1f9   : > { %p964_p13 = por %p963_p12, %p962_p11 }
 0x1fa   : > { %p960_p10 = pneg %p959_p9 }
 0x1fc   : > { %p965_p0 = pnand %p964_p13, %p960_p10 }
 0x1fe   : > { %968 = shalt.err (!%p965_p0)
}
 0x1ff   : > { %853 = dma.vmem_to_hbm [thread:$0]  (%p1090_p4), %s642_s10, 128, %s1241_s13, %s628_s14  }
 0x200 PF: > { %p859_p1 = scmp.ge.s32.totalorder %s1019_s20, 2  ;;  %s653_s8 = sand.u32 1, %s999_s15  }
 0x201   : > { %s654_s9 = scalar_lea.sflag [#allocation3], %s653_s8 }
 0x202   : > { %p856_p2 = pnand %p859_p1, %p1097_p8 }
 0x204   : > { %p857_p3 = pneg %p856_p2 }
 0x206   : > { %994 = dma.done.wait (%p857_p3), %s654_s9, 128  }
 0x207   : > { %996 = vsyncadd (%p857_p3), %s654_s9, 4294967168  ;;  %s17_s20 = sadd.s32 1, %s1019_s20   ;;  %s1288_s15 = smov %s1003_s16 }
 0x208   : > { %p14_p5 = scmp.ge.s32.totalorder %s17_s20, 4   ;;  %s1289_s16 = smov %s1007_s17 }
 0x209   : > { %s1290_s17 = smov %s1103_s28  ;;  %s1291_s18 = smov %s1015_s19 }
 0x20a   : > { %s1292_s19 = smov %s1294_s23  ;;  %16 = sbr.rel (!%p14_p5) target bundleno = 4 (0x4), region = 78 }
 0x20f   :  { %659 = vsyncpa [#allocation3], 1 }
 0x210   :  { %661 = vsyncpa [#allocation3 + $0x1], 1 }

</bundles_post_ra>
